<compile_context>
chip_gen: v7x
topology: tpu7x:2x2x1
jax: 0.10.0
libtpu: 0.0.40
codegen_flags: <defaults>
</compile_context>

<pallas_src>
import functools
import math

import jax
import jax.numpy as jnp
from jax import lax
from jax.experimental import pallas as pl
from jax.experimental.pallas import tpu as pltpu


def mha_kernel(x_ref, wqkv_ref, bqkv_ref, wo_ref, bo_ref, out_ref, *,
               num_heads, head_dim, seq_len, batch):
    """Single grid step processes the whole (flattened) batch.

    x_ref:    (B*S, H)   activations (f32)
    wqkv_ref: (H, 3*H)   fused [Q | K | V] input projection (Q columns pre-scaled)
    bqkv_ref: (1, 3*H)   fused projection bias (Q part pre-scaled)
    wo_ref:   (H, H)     output projection (already transposed: ctx @ wo_ref)
    bo_ref:   (1, H)     output projection bias
    out_ref:  (B*S, H)   output block
    """
    x = x_ref[...]                                   # (B*S, H); already f32
    hidden = num_heads * head_dim

    # One wide MXU push for all heads, all of Q/K/V; one fused bias add.
    qkv = jnp.dot(x, wqkv_ref[...],
                  preferred_element_type=jnp.float32) + bqkv_ref[...]   # (B*S, 3H)

    # Per-(head, batch) score tiles via static 8-lane / 8-sublane slices.
    # Scale already folded into the Q columns of wqkv.
    score_tiles = []
    v_tiles = []
    for h in range(num_heads):                       # static unroll (tiny head count)
        q_h = qkv[:, h * head_dim:(h + 1) * head_dim]                       # (B*S, hd)
        k_h = qkv[:, hidden + h * head_dim:hidden + (h + 1) * head_dim]     # (B*S, hd)
        v_h = qkv[:, 2 * hidden + h * head_dim:2 * hidden + (h + 1) * head_dim]
        for b in range(batch):                       # static unroll; sublane-aligned
            rs = slice(b * seq_len, (b + 1) * seq_len)
            qb, kb, vb = q_h[rs], k_h[rs], v_h[rs]   # (S, hd) each
            # Contract last dims of both operands - no explicit K transpose.
            s = lax.dot_general(qb, kb, (((1,), (1,)), ((), ())),
                                preferred_element_type=jnp.float32)          # (S, S)
            score_tiles.append(s)
            v_tiles.append(vb)

    # Single batched softmax over all (head, batch) tiles: one max, one exp, one sum,
    # one approx reciprocal instead of heads*batch of each.
    scores = jnp.concatenate(score_tiles, axis=0)    # (heads*B*S, S), sublane concat
    scores = scores - jnp.max(scores, axis=-1, keepdims=True)
    e = jnp.exp(scores)
    p = e * pl.reciprocal(jnp.sum(e, axis=-1, keepdims=True), approx=True)

    # P@V per tile, then merge_heads: lane-concat heads per batch, sublane-concat batches.
    ctx_rows = []
    for b in range(batch):
        head_parts = []
        for h in range(num_heads):
            idx = h * batch + b
            p_tile = p[idx * seq_len:(idx + 1) * seq_len]      # (S, S), static slice
            head_parts.append(jnp.dot(p_tile, v_tiles[idx],
                                      preferred_element_type=jnp.float32))  # (S, hd)
        ctx_rows.append(jnp.concatenate(head_parts, axis=-1))  # (S, H) lane concat
    ctx = jnp.concatenate(ctx_rows, axis=0)                    # (B*S, H) sublane concat

    # One K=H output projection push + bias; direct (B*S, H) store, no reshape.
    out = jnp.dot(ctx, wo_ref[...], preferred_element_type=jnp.float32) + bo_ref[...]
    out_ref[...] = out.astype(out_ref.dtype)


def multi_head_attention(x, params, num_heads):
    """x: [B, S, H] float32. params: (wq, bq, wk, bk, wv, bv, wo, bo) PyTorch-layout."""
    B, S, H = x.shape
    head_dim = H // num_heads
    wq, bq, wk, bk, wv, bv, wo, bo = params
    scale = 1.0 / math.sqrt(head_dim)

    # Parameter preparation (PyTorch [out, in] layout -> fused [Q|K|V] slab).
    # Output channel c of each projection maps to head c // head_dim, so direct
    # per-head lane slices inside the kernel are already in the right order.
    # One-time constant transform done at weight-load time in a real model.
    wqkv = jnp.concatenate([wq.T * scale, wk.T, wv.T], axis=1)          # (H, 3H)
    bqkv = jnp.concatenate([bq * scale, bk, bv]).reshape(1, 3 * H)      # (1, 3H)
    wo_t = wo.T                                                          # (H, H)
    bo_r = bo.reshape(1, H)

    x_flat = x.reshape(B * S, H)

    kernel = functools.partial(mha_kernel, num_heads=num_heads, head_dim=head_dim,
                               seq_len=S, batch=B)

    out_flat = pl.pallas_call(
        kernel,
        out_shape=jax.ShapeDtypeStruct((B * S, H), x.dtype),
        grid=(1,),
        in_specs=[
            pl.BlockSpec((B * S, H), lambda i: (0, 0)),     # activations
            pl.BlockSpec((H, 3 * H), lambda i: (0, 0)),     # fused QKV weight (Q pre-scaled)
            pl.BlockSpec((1, 3 * H), lambda i: (0, 0)),     # fused QKV bias
            pl.BlockSpec((H, H), lambda i: (0, 0)),         # out_proj weight (transposed)
            pl.BlockSpec((1, H), lambda i: (0, 0)),         # out_proj bias
        ],
        out_specs=pl.BlockSpec((B * S, H), lambda i: (0, 0)),
        compiler_params=pltpu.CompilerParams(dimension_semantics=("arbitrary",)),
    )(x_flat, wqkv, bqkv, wo_t, bo_r)

    return out_flat.reshape(B, S, H)


def ref_mha(x, params, num_heads):
    """Pure-JAX reference matching the PyTorch forward (no masks, eval dropout)."""
    wq, bq, wk, bk, wv, bv, wo, bo = params
    B, S, H = x.shape
    hd = H // num_heads
    q = x @ wq.T + bq
    k = x @ wk.T + bk
    v = x @ wv.T + bv

    def split(t):
        return t.reshape(B, S, num_heads, hd).transpose(0, 2, 1, 3)

    q, k, v = split(q), split(k), split(v)
    scores = jnp.einsum('bhqd,bhkd->bhqk', q, k) / math.sqrt(hd)
    probs = jax.nn.softmax(scores, axis=-1)
    ctx = jnp.einsum('bhqk,bhkd->bhqd', probs, v)
    ctx = ctx.transpose(0, 2, 1, 3).reshape(B, S, H)
    return ctx @ wo.T + bo


if __name__ == "__main__":
    # Config: hidden_size=32, num_attention_heads=4, initializer_range=0.02.
    B, S, H = 2, 8, 32
    NUM_HEADS = 4
    INIT_RANGE = 0.02

    key = jax.random.PRNGKey(0)
    kx, kq, kk, kv, ko = jax.random.split(key, 5)

    x = jax.random.normal(kx, (B, S, H), dtype=jnp.float32)

    # Deterministic init mirroring _init_weights: normal(std=initializer_range), zero bias.
    wq = INIT_RANGE * jax.random.normal(kq, (H, H), dtype=jnp.float32)  # [out, in]
    wk = INIT_RANGE * jax.random.normal(kk, (H, H), dtype=jnp.float32)
    wv = INIT_RANGE * jax.random.normal(kv, (H, H), dtype=jnp.float32)
    wo = INIT_RANGE * jax.random.normal(ko, (H, H), dtype=jnp.float32)
    bq = jnp.zeros((H,), dtype=jnp.float32)
    bk = jnp.zeros((H,), dtype=jnp.float32)
    bv = jnp.zeros((H,), dtype=jnp.float32)
    bo = jnp.zeros((H,), dtype=jnp.float32)

    params = (wq, bq, wk, bk, wv, bv, wo, bo)

    out = multi_head_attention(x, params, NUM_HEADS)
    out = jax.block_until_ready(out)

    ref = ref_mha(x, params, NUM_HEADS)
    assert out.shape == (B, S, H)
    # Slightly looser tolerance than exact-divide softmax because of the EUP approx
    # reciprocal; at these magnitudes the error is << 1e-5 in practice.
    assert jnp.allclose(out, ref, atol=1e-4, rtol=1e-4), \
        f"max abs diff {jnp.max(jnp.abs(out - ref))}"

    print("KERNEL_OK")
</pallas_src>

<mosaic_0001>
module attributes {stable_mosaic.version = 11 : i64} {
  func.func @mha_kernel(%arg0: i32, %arg1: memref<16x32xf32, #tpu.memory_space<vmem>>, %arg2: memref<32x96xf32, #tpu.memory_space<vmem>>, %arg3: memref<1x96xf32, #tpu.memory_space<vmem>>, %arg4: memref<32x32xf32, #tpu.memory_space<vmem>>, %arg5: memref<1x32xf32, #tpu.memory_space<vmem>>, %arg6: memref<16x32xf32, #tpu.memory_space<vmem>>) attributes {dimension_semantics = [#tpu.dimension_semantics<arbitrary>], iteration_bounds = array<i64: 1>, scalar_prefetch = 0 : i64, scratch_operands = 0 : i64, tpu.core_type = #tpu.core_type<tc>, window_params = [{pipeline_mode = #tpu.pipeline_mode<synchronous>, transform_indices = @transform_0, window_bounds = array<i64: 16, 32>}, {pipeline_mode = #tpu.pipeline_mode<synchronous>, transform_indices = @transform_1, window_bounds = array<i64: 32, 96>}, {pipeline_mode = #tpu.pipeline_mode<synchronous>, transform_indices = @transform_2, window_bounds = array<i64: 1, 96>}, {pipeline_mode = #tpu.pipeline_mode<synchronous>, transform_indices = @transform_3, window_bounds = array<i64: 32, 32>}, {pipeline_mode = #tpu.pipeline_mode<synchronous>, transform_indices = @transform_4, window_bounds = array<i64: 1, 32>}, {pipeline_mode = #tpu.pipeline_mode<synchronous>, transform_indices = @transform_5, window_bounds = array<i64: 16, 32>}]} {
    %c0 = arith.constant 0 : index
    %c0_0 = arith.constant 0 : index
    %0 = vector.load %arg1[%c0, %c0_0] : memref<16x32xf32, #tpu.memory_space<vmem>>, vector<16x32xf32>
    %c0_1 = arith.constant 0 : index
    %c0_2 = arith.constant 0 : index
    %1 = vector.load %arg2[%c0_1, %c0_2] : memref<32x96xf32, #tpu.memory_space<vmem>>, vector<32x96xf32>
    %cst = arith.constant dense<0.000000e+00> : vector<16x96xf32>
    %2 = tpu.matmul %0, %1, %cst {dimension_numbers = #tpu.dot_dimension_numbers<[1], [0], [0], [1], [0, 0, 1, 1], [], []>} : vector<16x32xf32>, vector<32x96xf32>, vector<16x96xf32> -> vector<16x96xf32>
    %c0_3 = arith.constant 0 : index
    %c0_4 = arith.constant 0 : index
    %3 = vector.load %arg3[%c0_3, %c0_4] : memref<1x96xf32, #tpu.memory_space<vmem>>, vector<1x96xf32>
    %4 = vector.broadcast %3 : vector<1x96xf32> to vector<16x96xf32>
    %5 = arith.addf %2, %4 : vector<16x96xf32>
    %6 = vector.extract_strided_slice %5 {offsets = [0, 0], sizes = [16, 8], strides = [1, 1]} : vector<16x96xf32> to vector<16x8xf32>
    %7 = vector.extract_strided_slice %5 {offsets = [0, 32], sizes = [16, 8], strides = [1, 1]} : vector<16x96xf32> to vector<16x8xf32>
    %8 = vector.extract_strided_slice %5 {offsets = [0, 64], sizes = [16, 8], strides = [1, 1]} : vector<16x96xf32> to vector<16x8xf32>
    %9 = vector.extract_strided_slice %6 {offsets = [0, 0], sizes = [8, 8], strides = [1, 1]} : vector<16x8xf32> to vector<8x8xf32>
    %10 = vector.extract_strided_slice %7 {offsets = [0, 0], sizes = [8, 8], strides = [1, 1]} : vector<16x8xf32> to vector<8x8xf32>
    %11 = vector.extract_strided_slice %8 {offsets = [0, 0], sizes = [8, 8], strides = [1, 1]} : vector<16x8xf32> to vector<8x8xf32>
    %cst_5 = arith.constant dense<0.000000e+00> : vector<8x8xf32>
    %12 = tpu.matmul %9, %10, %cst_5 {dimension_numbers = #tpu.dot_dimension_numbers<[1], [1], [0], [0], [0, 0, 1, 0], [], []>} : vector<8x8xf32>, vector<8x8xf32>, vector<8x8xf32> -> vector<8x8xf32>
    %13 = vector.extract_strided_slice %6 {offsets = [8, 0], sizes = [8, 8], strides = [1, 1]} : vector<16x8xf32> to vector<8x8xf32>
    %14 = vector.extract_strided_slice %7 {offsets = [8, 0], sizes = [8, 8], strides = [1, 1]} : vector<16x8xf32> to vector<8x8xf32>
    %15 = vector.extract_strided_slice %8 {offsets = [8, 0], sizes = [8, 8], strides = [1, 1]} : vector<16x8xf32> to vector<8x8xf32>
    %cst_6 = arith.constant dense<0.000000e+00> : vector<8x8xf32>
    %16 = tpu.matmul %13, %14, %cst_6 {dimension_numbers = #tpu.dot_dimension_numbers<[1], [1], [0], [0], [0, 0, 1, 0], [], []>} : vector<8x8xf32>, vector<8x8xf32>, vector<8x8xf32> -> vector<8x8xf32>
    %17 = vector.extract_strided_slice %5 {offsets = [0, 8], sizes = [16, 8], strides = [1, 1]} : vector<16x96xf32> to vector<16x8xf32>
    %18 = vector.extract_strided_slice %5 {offsets = [0, 40], sizes = [16, 8], strides = [1, 1]} : vector<16x96xf32> to vector<16x8xf32>
    %19 = vector.extract_strided_slice %5 {offsets = [0, 72], sizes = [16, 8], strides = [1, 1]} : vector<16x96xf32> to vector<16x8xf32>
    %20 = vector.extract_strided_slice %17 {offsets = [0, 0], sizes = [8, 8], strides = [1, 1]} : vector<16x8xf32> to vector<8x8xf32>
    %21 = vector.extract_strided_slice %18 {offsets = [0, 0], sizes = [8, 8], strides = [1, 1]} : vector<16x8xf32> to vector<8x8xf32>
    %22 = vector.extract_strided_slice %19 {offsets = [0, 0], sizes = [8, 8], strides = [1, 1]} : vector<16x8xf32> to vector<8x8xf32>
    %cst_7 = arith.constant dense<0.000000e+00> : vector<8x8xf32>
    %23 = tpu.matmul %20, %21, %cst_7 {dimension_numbers = #tpu.dot_dimension_numbers<[1], [1], [0], [0], [0, 0, 1, 0], [], []>} : vector<8x8xf32>, vector<8x8xf32>, vector<8x8xf32> -> vector<8x8xf32>
    %24 = vector.extract_strided_slice %17 {offsets = [8, 0], sizes = [8, 8], strides = [1, 1]} : vector<16x8xf32> to vector<8x8xf32>
    %25 = vector.extract_strided_slice %18 {offsets = [8, 0], sizes = [8, 8], strides = [1, 1]} : vector<16x8xf32> to vector<8x8xf32>
    %26 = vector.extract_strided_slice %19 {offsets = [8, 0], sizes = [8, 8], strides = [1, 1]} : vector<16x8xf32> to vector<8x8xf32>
    %cst_8 = arith.constant dense<0.000000e+00> : vector<8x8xf32>
    %27 = tpu.matmul %24, %25, %cst_8 {dimension_numbers = #tpu.dot_dimension_numbers<[1], [1], [0], [0], [0, 0, 1, 0], [], []>} : vector<8x8xf32>, vector<8x8xf32>, vector<8x8xf32> -> vector<8x8xf32>
    %28 = vector.extract_strided_slice %5 {offsets = [0, 16], sizes = [16, 8], strides = [1, 1]} : vector<16x96xf32> to vector<16x8xf32>
    %29 = vector.extract_strided_slice %5 {offsets = [0, 48], sizes = [16, 8], strides = [1, 1]} : vector<16x96xf32> to vector<16x8xf32>
    %30 = vector.extract_strided_slice %5 {offsets = [0, 80], sizes = [16, 8], strides = [1, 1]} : vector<16x96xf32> to vector<16x8xf32>
    %31 = vector.extract_strided_slice %28 {offsets = [0, 0], sizes = [8, 8], strides = [1, 1]} : vector<16x8xf32> to vector<8x8xf32>
    %32 = vector.extract_strided_slice %29 {offsets = [0, 0], sizes = [8, 8], strides = [1, 1]} : vector<16x8xf32> to vector<8x8xf32>
    %33 = vector.extract_strided_slice %30 {offsets = [0, 0], sizes = [8, 8], strides = [1, 1]} : vector<16x8xf32> to vector<8x8xf32>
    %cst_9 = arith.constant dense<0.000000e+00> : vector<8x8xf32>
    %34 = tpu.matmul %31, %32, %cst_9 {dimension_numbers = #tpu.dot_dimension_numbers<[1], [1], [0], [0], [0, 0, 1, 0], [], []>} : vector<8x8xf32>, vector<8x8xf32>, vector<8x8xf32> -> vector<8x8xf32>
    %35 = vector.extract_strided_slice %28 {offsets = [8, 0], sizes = [8, 8], strides = [1, 1]} : vector<16x8xf32> to vector<8x8xf32>
    %36 = vector.extract_strided_slice %29 {offsets = [8, 0], sizes = [8, 8], strides = [1, 1]} : vector<16x8xf32> to vector<8x8xf32>
    %37 = vector.extract_strided_slice %30 {offsets = [8, 0], sizes = [8, 8], strides = [1, 1]} : vector<16x8xf32> to vector<8x8xf32>
    %cst_10 = arith.constant dense<0.000000e+00> : vector<8x8xf32>
    %38 = tpu.matmul %35, %36, %cst_10 {dimension_numbers = #tpu.dot_dimension_numbers<[1], [1], [0], [0], [0, 0, 1, 0], [], []>} : vector<8x8xf32>, vector<8x8xf32>, vector<8x8xf32> -> vector<8x8xf32>
    %39 = vector.extract_strided_slice %5 {offsets = [0, 24], sizes = [16, 8], strides = [1, 1]} : vector<16x96xf32> to vector<16x8xf32>
    %40 = vector.extract_strided_slice %5 {offsets = [0, 56], sizes = [16, 8], strides = [1, 1]} : vector<16x96xf32> to vector<16x8xf32>
    %41 = vector.extract_strided_slice %5 {offsets = [0, 88], sizes = [16, 8], strides = [1, 1]} : vector<16x96xf32> to vector<16x8xf32>
    %42 = vector.extract_strided_slice %39 {offsets = [0, 0], sizes = [8, 8], strides = [1, 1]} : vector<16x8xf32> to vector<8x8xf32>
    %43 = vector.extract_strided_slice %40 {offsets = [0, 0], sizes = [8, 8], strides = [1, 1]} : vector<16x8xf32> to vector<8x8xf32>
    %44 = vector.extract_strided_slice %41 {offsets = [0, 0], sizes = [8, 8], strides = [1, 1]} : vector<16x8xf32> to vector<8x8xf32>
    %cst_11 = arith.constant dense<0.000000e+00> : vector<8x8xf32>
    %45 = tpu.matmul %42, %43, %cst_11 {dimension_numbers = #tpu.dot_dimension_numbers<[1], [1], [0], [0], [0, 0, 1, 0], [], []>} : vector<8x8xf32>, vector<8x8xf32>, vector<8x8xf32> -> vector<8x8xf32>
    %46 = vector.extract_strided_slice %39 {offsets = [8, 0], sizes = [8, 8], strides = [1, 1]} : vector<16x8xf32> to vector<8x8xf32>
    %47 = vector.extract_strided_slice %40 {offsets = [8, 0], sizes = [8, 8], strides = [1, 1]} : vector<16x8xf32> to vector<8x8xf32>
    %48 = vector.extract_strided_slice %41 {offsets = [8, 0], sizes = [8, 8], strides = [1, 1]} : vector<16x8xf32> to vector<8x8xf32>
    %cst_12 = arith.constant dense<0.000000e+00> : vector<8x8xf32>
    %49 = tpu.matmul %46, %47, %cst_12 {dimension_numbers = #tpu.dot_dimension_numbers<[1], [1], [0], [0], [0, 0, 1, 0], [], []>} : vector<8x8xf32>, vector<8x8xf32>, vector<8x8xf32> -> vector<8x8xf32>
    %50 = tpu.concatenate %12, %16, %23, %27, %34, %38, %45, %49 in 0 : vector<8x8xf32>, vector<8x8xf32>, vector<8x8xf32>, vector<8x8xf32>, vector<8x8xf32>, vector<8x8xf32>, vector<8x8xf32>, vector<8x8xf32> -> vector<64x8xf32>
    %cst_13 = arith.constant dense<0xFF800000> : vector<64xf32>
    %51 = vector.multi_reduction <maximumf>, %50, %cst_13 [1] : vector<64x8xf32> to vector<64xf32>
    %52 = vector.shape_cast %51 : vector<64xf32> to vector<64x1xf32>
    %53 = vector.broadcast %52 : vector<64x1xf32> to vector<64x8xf32>
    %54 = arith.subf %50, %53 : vector<64x8xf32>
    %55 = math.exp %54 : vector<64x8xf32>
    %cst_14 = arith.constant dense<0.000000e+00> : vector<64xf32>
    %56 = vector.multi_reduction <add>, %55, %cst_14 [1] : vector<64x8xf32> to vector<64xf32>
    %57 = vector.shape_cast %56 : vector<64xf32> to vector<64x1xf32>
    %58 = tpu.reciprocal %57 {approx = true} : vector<64x1xf32> -> vector<64x1xf32>
    %59 = vector.broadcast %58 : vector<64x1xf32> to vector<64x8xf32>
    %60 = arith.mulf %55, %59 : vector<64x8xf32>
    %61 = vector.extract_strided_slice %60 {offsets = [0, 0], sizes = [8, 8], strides = [1, 1]} : vector<64x8xf32> to vector<8x8xf32>
    %cst_15 = arith.constant dense<0.000000e+00> : vector<8x8xf32>
    %62 = tpu.matmul %61, %11, %cst_15 {dimension_numbers = #tpu.dot_dimension_numbers<[1], [0], [0], [1], [0, 0, 1, 1], [], []>} : vector<8x8xf32>, vector<8x8xf32>, vector<8x8xf32> -> vector<8x8xf32>
    %63 = vector.extract_strided_slice %60 {offsets = [16, 0], sizes = [8, 8], strides = [1, 1]} : vector<64x8xf32> to vector<8x8xf32>
    %cst_16 = arith.constant dense<0.000000e+00> : vector<8x8xf32>
    %64 = tpu.matmul %63, %22, %cst_16 {dimension_numbers = #tpu.dot_dimension_numbers<[1], [0], [0], [1], [0, 0, 1, 1], [], []>} : vector<8x8xf32>, vector<8x8xf32>, vector<8x8xf32> -> vector<8x8xf32>
    %65 = vector.extract_strided_slice %60 {offsets = [32, 0], sizes = [8, 8], strides = [1, 1]} : vector<64x8xf32> to vector<8x8xf32>
    %cst_17 = arith.constant dense<0.000000e+00> : vector<8x8xf32>
    %66 = tpu.matmul %65, %33, %cst_17 {dimension_numbers = #tpu.dot_dimension_numbers<[1], [0], [0], [1], [0, 0, 1, 1], [], []>} : vector<8x8xf32>, vector<8x8xf32>, vector<8x8xf32> -> vector<8x8xf32>
    %67 = vector.extract_strided_slice %60 {offsets = [48, 0], sizes = [8, 8], strides = [1, 1]} : vector<64x8xf32> to vector<8x8xf32>
    %cst_18 = arith.constant dense<0.000000e+00> : vector<8x8xf32>
    %68 = tpu.matmul %67, %44, %cst_18 {dimension_numbers = #tpu.dot_dimension_numbers<[1], [0], [0], [1], [0, 0, 1, 1], [], []>} : vector<8x8xf32>, vector<8x8xf32>, vector<8x8xf32> -> vector<8x8xf32>
    %69 = tpu.concatenate %62, %64, %66, %68 in 1 : vector<8x8xf32>, vector<8x8xf32>, vector<8x8xf32>, vector<8x8xf32> -> vector<8x32xf32>
    %70 = vector.extract_strided_slice %60 {offsets = [8, 0], sizes = [8, 8], strides = [1, 1]} : vector<64x8xf32> to vector<8x8xf32>
    %cst_19 = arith.constant dense<0.000000e+00> : vector<8x8xf32>
    %71 = tpu.matmul %70, %15, %cst_19 {dimension_numbers = #tpu.dot_dimension_numbers<[1], [0], [0], [1], [0, 0, 1, 1], [], []>} : vector<8x8xf32>, vector<8x8xf32>, vector<8x8xf32> -> vector<8x8xf32>
    %72 = vector.extract_strided_slice %60 {offsets = [24, 0], sizes = [8, 8], strides = [1, 1]} : vector<64x8xf32> to vector<8x8xf32>
    %cst_20 = arith.constant dense<0.000000e+00> : vector<8x8xf32>
    %73 = tpu.matmul %72, %26, %cst_20 {dimension_numbers = #tpu.dot_dimension_numbers<[1], [0], [0], [1], [0, 0, 1, 1], [], []>} : vector<8x8xf32>, vector<8x8xf32>, vector<8x8xf32> -> vector<8x8xf32>
    %74 = vector.extract_strided_slice %60 {offsets = [40, 0], sizes = [8, 8], strides = [1, 1]} : vector<64x8xf32> to vector<8x8xf32>
    %cst_21 = arith.constant dense<0.000000e+00> : vector<8x8xf32>
    %75 = tpu.matmul %74, %37, %cst_21 {dimension_numbers = #tpu.dot_dimension_numbers<[1], [0], [0], [1], [0, 0, 1, 1], [], []>} : vector<8x8xf32>, vector<8x8xf32>, vector<8x8xf32> -> vector<8x8xf32>
    %76 = vector.extract_strided_slice %60 {offsets = [56, 0], sizes = [8, 8], strides = [1, 1]} : vector<64x8xf32> to vector<8x8xf32>
    %cst_22 = arith.constant dense<0.000000e+00> : vector<8x8xf32>
    %77 = tpu.matmul %76, %48, %cst_22 {dimension_numbers = #tpu.dot_dimension_numbers<[1], [0], [0], [1], [0, 0, 1, 1], [], []>} : vector<8x8xf32>, vector<8x8xf32>, vector<8x8xf32> -> vector<8x8xf32>
    %78 = tpu.concatenate %71, %73, %75, %77 in 1 : vector<8x8xf32>, vector<8x8xf32>, vector<8x8xf32>, vector<8x8xf32> -> vector<8x32xf32>
    %79 = tpu.concatenate %69, %78 in 0 : vector<8x32xf32>, vector<8x32xf32> -> vector<16x32xf32>
    %c0_23 = arith.constant 0 : index
    %c0_24 = arith.constant 0 : index
    %80 = vector.load %arg4[%c0_23, %c0_24] : memref<32x32xf32, #tpu.memory_space<vmem>>, vector<32x32xf32>
    %cst_25 = arith.constant dense<0.000000e+00> : vector<16x32xf32>
    %81 = tpu.matmul %79, %80, %cst_25 {dimension_numbers = #tpu.dot_dimension_numbers<[1], [0], [0], [1], [0, 0, 1, 1], [], []>} : vector<16x32xf32>, vector<32x32xf32>, vector<16x32xf32> -> vector<16x32xf32>
    %c0_26 = arith.constant 0 : index
    %c0_27 = arith.constant 0 : index
    %82 = vector.load %arg5[%c0_26, %c0_27] : memref<1x32xf32, #tpu.memory_space<vmem>>, vector<1x32xf32>
    %83 = vector.broadcast %82 : vector<1x32xf32> to vector<16x32xf32>
    %84 = arith.addf %81, %83 : vector<16x32xf32>
    %c0_28 = arith.constant 0 : index
    %c0_29 = arith.constant 0 : index
    %85 = vector.load %arg6[%c0_28, %c0_29] : memref<16x32xf32, #tpu.memory_space<vmem>>, vector<16x32xf32>
    tpu.vector_store %arg6[%c0_28, %c0_29], %84 {strides = array<i32>} : memref<16x32xf32, #tpu.memory_space<vmem>>, vector<16x32xf32>,
    return
  }
  func.func @transform_0(%arg0: i32) -> (i32, i32) {
    %c0_i32 = arith.constant 0 : i32
    %c0_i32_0 = arith.constant 0 : i32
    %c0_i32_1 = arith.constant 0 : i32
    return %c0_i32, %c0_i32_0 : i32, i32
  }
  func.func @transform_1(%arg0: i32) -> (i32, i32) {
    %c0_i32 = arith.constant 0 : i32
    %c0_i32_0 = arith.constant 0 : i32
    %c0_i32_1 = arith.constant 0 : i32
    return %c0_i32, %c0_i32_0 : i32, i32
  }
  func.func @transform_2(%arg0: i32) -> (i32, i32) {
    %c0_i32 = arith.constant 0 : i32
    %c0_i32_0 = arith.constant 0 : i32
    %c0_i32_1 = arith.constant 0 : i32
    return %c0_i32, %c0_i32_0 : i32, i32
  }
  func.func @transform_3(%arg0: i32) -> (i32, i32) {
    %c0_i32 = arith.constant 0 : i32
    %c0_i32_0 = arith.constant 0 : i32
    %c0_i32_1 = arith.constant 0 : i32
    return %c0_i32, %c0_i32_0 : i32, i32
  }
  func.func @transform_4(%arg0: i32) -> (i32, i32) {
    %c0_i32 = arith.constant 0 : i32
    %c0_i32_0 = arith.constant 0 : i32
    %c0_i32_1 = arith.constant 0 : i32
    return %c0_i32, %c0_i32_0 : i32, i32
  }
  func.func @transform_5(%arg0: i32) -> (i32, i32) {
    %c0_i32 = arith.constant 0 : i32
    %c0_i32_0 = arith.constant 0 : i32
    %c0_i32_1 = arith.constant 0 : i32
    return %c0_i32, %c0_i32_0 : i32, i32
  }
}

</mosaic_0001>

<bundles_post_ra>
// kernel: tpu_custom_call.1
= control target key start
LH: loop header
LB: loop body
LE: loop exit
PB: predicated region body
PF: predicated region fallthrough
CT: control target
= control target key end

     0   :  { %10 = vsyncpa [#allocation3], 0  ;;  %s2225_s0 = inlined_call_operand.hbm [shape: f32[16,32], index: 0, kind: input, shape index: {}]   ;;  %s2226_s1 = inlined_call_operand.hbm [shape: f32[32,96], index: 1, kind: input, shape index: {}]   ;;  %s2227_s2 = inlined_call_operand.vmem [shape: f32[1,96], index: 2, kind: input, shape index: {}]   ;;  %s2228_s3 = inlined_call_operand.hbm [shape: f32[32,32], index: 3, kind: input, shape index: {}]   ;;  %s2229_s4 = inlined_call_operand.vmem [shape: f32[1,32], index: 4, kind: input, shape index: {}]   ;;  %s2230_s5 = inlined_call_operand.hbm [shape: f32[16,32], index: 5, kind: output, shape index: {}]  }
   0x1   :  { %11 = vsyncpa [#allocation6], 0 }
   0x2   :  { %12 = vsyncpa [#allocation4], 0  ;;  %s1959_s18 = smov [#allocation5]   ;;  %s1960_s20 = smov [#allocation2]  }
   0x3   :  { %s30_s19 = sshll.u32 %s1959_s18, 4  ;;  %s18_s21 = sshll.u32 %s1960_s20, 4  ;;  %s31_s19 = int_to_ptr.vmem [resolvable:$true] %s30_s19  ;;  %s2010_s21 = int_to_ptr.vmem [resolvable:$true] %s18_s21 }
   0x4   :  { %s1865_s24 = scalar_lea.hbm %s2226_s1, 512 }
   0x5   :  { %p1866_p0 = scmp.ne.s32.totalorder %s2226_s1, %s1865_s24  ;;  %p1869_p1 = scmp.lt.u32.totalorder %s1865_s24, %s2226_s1 }
   0x7   :  { %p1871_p2 = pnand %p1869_p1, %p1866_p0 }
   0x9   :  { %1874 = shalt.err (!%p1871_p2)
}
   0xa   :  { %s1875_s29 = scalar_lea.vmem %s31_s19, 512  ;;  %p1880_p4 = scmp.lt.s32.totalorder %s31_s19, %s31_s19 }
   0xb   :  { %p1876_p3 = scmp.ne.s32.totalorder %s31_s19, %s1875_s29  ;;  %p1881_p5 = scmp.lt.s32.totalorder %s1875_s29, %s1875_s29 }
   0xd   :  { %p1882_p6 = por %p1881_p5, %p1880_p4 }
   0xf   :  { %p1883_p7 = pnand %p1882_p6, %p1876_p3 }
  0x11   :  { %1886 = shalt.err (!%p1883_p7)
}
  0x12   :  { %s1961_s30 = smov 128   ;;  %s1962_s6 = smov 8  }
  0x13   :  { %36 = dma.hbm_to_vmem [thread:$0]  %s2226_s1, 512, %s31_s19, [#allocation6], %s1961_s30, %s1961_s30, %s1962_s6  }
  0x14   :  { %s1887_s11 = scalar_lea.hbm %s2225_s0, 256 }
  0x15   :  { %p1888_p8 = scmp.ne.s32.totalorder %s2225_s0, %s1887_s11  ;;  %p1891_p9 = scmp.lt.u32.totalorder %s1887_s11, %s2225_s0 }
  0x17   :  { %p1893_p10 = pnand %p1891_p9, %p1888_p8 }
  0x19   :  { %1896 = shalt.err (!%p1893_p10)
}
  0x1a   :  { %s1897_s16 = scalar_lea.vmem %s2010_s21, 256  ;;  %p1902_p12 = scmp.lt.s32.totalorder %s2010_s21, %s2010_s21 }
  0x1b   :  { %p1898_p11 = scmp.ne.s32.totalorder %s2010_s21, %s1897_s16  ;;  %p1903_p13 = scmp.lt.s32.totalorder %s1897_s16, %s1897_s16 }
  0x1d   :  { %p1904_p0 = por %p1903_p13, %p1902_p12 }
  0x1f   :  { %p1905_p1 = pnand %p1904_p0, %p1898_p11 }
  0x21   :  { %1908 = shalt.err (!%p1905_p1)
}
  0x22   :  { %24 = dma.hbm_to_vmem [thread:$0]  %s2225_s0, 256, %s2010_s21, [#allocation3], %s1961_s30, %s1961_s30, %s1962_s6  }
  0x23   :  { %s1963_s18 = smov [#allocation7]   ;;  %s1909_s23 = scalar_lea.hbm %s2228_s3, 512 }
  0x24   :  { %s44_s19 = sshll.u32 %s1963_s18, 4  ;;  %p1910_p2 = scmp.ne.s32.totalorder %s2228_s3, %s1909_s23  ;;  %s45_s19 = int_to_ptr.vmem [resolvable:$true] %s44_s19 }
  0x25   :  { %p1913_p3 = scmp.lt.u32.totalorder %s1909_s23, %s2228_s3 }
  0x27   :  { %p1915_p4 = pnand %p1913_p3, %p1910_p2 }
  0x29   :  { %1918 = shalt.err (!%p1915_p4)
}
  0x2a   :  { %s1919_s28 = scalar_lea.vmem %s45_s19, 512  ;;  %p1924_p6 = scmp.lt.s32.totalorder %s45_s19, %s45_s19 }
  0x2b   :  { %p1920_p5 = scmp.ne.s32.totalorder %s45_s19, %s1919_s28  ;;  %p1925_p7 = scmp.lt.s32.totalorder %s1919_s28, %s1919_s28 }
  0x2d   :  { %p1926_p8 = por %p1925_p7, %p1924_p6 }
  0x2f   :  { %p1927_p9 = pnand %p1926_p8, %p1920_p5 }
  0x31   :  { %1930 = shalt.err (!%p1927_p9)
}
  0x32   :  { %50 = dma.hbm_to_vmem [thread:$0]  %s2228_s3, 512, %s45_s19, [#allocation6], %s1961_s30, %s1961_s30, %s1962_s6  }
  0x33   :  { %1953 = dma.done.wait [#allocation3], 256  }
  0x34   :  { %1954 = vsyncadd [#allocation3], 4294967040 }
  0x35   :  { %1955 = dma.done.wait [#allocation6], 1024  }
  0x36   :  { %1956 = vsyncadd [#allocation6], 4294966272  ;;  %vm75_vm0 = vcmask 261120   ;;  %v64_v0 = vld [vmem:[#allocation5] sm:$0xff]  ;;  %v65_v1 = vld [vmem:[#allocation5 + $0x8] sm:$0xff]  ;;  %v1964_v8 = vmov 0.0  }
  0x37   :  { %v66_v2 = vld [vmem:[#allocation5 + $0x10] sm:$0xff]  ;;  %v1796_v3 = vpack.c.bf16 %v65_v1, %v64_v0  ;;  %v67_v4 = vld [vmem:[#allocation5 + $0x18] sm:$0xff]  ;;  %1705 = vmatprep.subr.mxu1 %v1964_v8  ;;  %vm1965_vm1 = vmmov 0   ;;  %s1966_s7 = smov 96   ;;  %s1967_s8 = smov 88   ;;  %vm160_vm2 = vcmask 64512  }
  0x38   :  { %v62_v5 = vld [vmem:[#allocation2] sm:$0xff]  ;;  %v1800_v6 = vpack.c.bf16 %v67_v4, %v66_v2  ;;  %v63_v7 = vld [vmem:[#allocation2 + $0x8] sm:$0xff]  ;;  %1707 = vmatprep.mubr.msk.f32.mxu1 %vm1965_vm1, %v1964_v8  ;;  %s1968_s9 = smov 80   ;;  %s1970_s10 = smov 120   ;;  %vm1185_vm3 = vcmask 130048   ;;  %vm1187_vm4 = vcmask 195584  }
  0x39   :  { %1702 = vmatprep.mubr.msk.f32.mxu0 %vm75_vm0, %v62_v5  ;;  %1797 = vmatprep.subr.bf16.mxu0 %v1796_v3  ;;  %v1620_v9 = vld [vmem:[%s2227_s2] ss:$0 sm:$0xff]  ;;  %s1969_s2 = smov 112   ;;  %s1971_s11 = smov 72  }
  0x3a   :  { %1799 = vmatpush3.bf16.msra.mxu0 %v1796_v3  ;;  %s1972_s12 = smov 104   ;;  %s1973_s13 = smov 64  }
  0x3b   :  { %1801 = vmatprep.subr.bf16.mxu0 %v1800_v6  ;;  %s1974_s14 = smov 48   ;;  %s1975_s15 = smov 40  }
  0x3c   :  { %s1976_s16 = smov 56   ;;  %s1977_s1 = smov 16  }
  0x3d   :  { %s1978_s17 = smov 24   ;;  %s1979_s20 = smov [#allocation8]  }
  0x3e   :  { %1803 = vmatpush3.bf16.msra.mxu0 %v1800_v6  ;;  %s1607_s22 = sshll.u32 %s1979_s20, 4  ;;  %s1608_s22 = int_to_ptr.vmem [resolvable:$true] %s1607_s22 }
  0x3f   :  { %1725 = vmatprep.subr.mxu0 %v1964_v8  ;;  %s1931_s23 = scalar_lea.vmem %s1608_s22, 256  ;;  %p1936_p11 = scmp.lt.s32.totalorder %s1608_s22, %s1608_s22 }
  0x40   :  { %p1932_p10 = scmp.ne.s32.totalorder %s1608_s22, %s1931_s23  ;;  %p1937_p12 = scmp.lt.s32.totalorder %s1931_s23, %s1931_s23 }
  0x41   :  { %1703 = vmatmul.mubr.msk.f32.vlgmr.msra.gmra.mrb[0].mxu0 %vm75_vm0, %v63_v7 }
  0x42   :  { %1727 = vmatprep.mubr.msk.f32.mxu0 %vm1965_vm1, %v1964_v8  ;;  %p1938_p13 = por %p1937_p12, %p1936_p11 }
  0x44   :  { %p1939_p0 = pnand %p1938_p13, %p1932_p10 }
 0x114   :  { %v1704_v10 = vpop.f32.mrb[0].mxu0 }
 0x115   :  { %v2073_v11 = vadd.f32 %v1704_v10, %v1620_v9  ;;  %v148_v12 = vpop.f32.mrb[1].mxu0 }
 0x116   :  { %v2075_v13 = vadd.f32 %v1620_v9, %v148_v12 }
 0x117   :  { %236 = vrot.lane.b32.xlu0 %v2073_v11, %s1966_s7 }
 0x118   :  { %314 = vrot.lane.b32.xlu1 %v2075_v13, %s1967_s8 }
 0x11b   :  { %158 = vrot.lane.b32.xlu0 %v2075_v13, %s1966_s7 }
 0x11c   :  { %470 = vrot.lane.b32.xlu1 %v2075_v13, %s1968_s9 }
 0x11f   :  { %392 = vrot.lane.b32.xlu0 %v2073_v11, %s1967_s8 }
 0x120   :  { %468 = vrot.lane.b32.xlu1 %v2075_v13, %s1969_s2 }
 0x123   :  { %312 = vrot.lane.b32.xlu0 %v2075_v13, %s1970_s10 }
 0x124   :  { %626 = vrot.lane.b32.xlu1 %v2075_v13, %s1971_s11 }
 0x127   :  { %390 = vrot.lane.b32.xlu0 %v2073_v11, %s1970_s10 }
 0x128   :  { %624 = vrot.lane.b32.xlu1 %v2075_v13, %s1972_s12 }
 0x12b   :  { %548 = vrot.lane.b32.xlu0 %v2073_v11, %s1968_s9 }
 0x12c   :  { %546 = vrot.lane.b32.xlu1 %v2073_v11, %s1969_s2 }
 0x12f   :  { %704 = vrot.lane.b32.xlu0 %v2073_v11, %s1971_s11 }
 0x130   :  { %702 = vrot.lane.b32.xlu1 %v2073_v11, %s1972_s12 }
 0x189   :  { %v237_v14 = vpop.permute.xlu0 %236 }
 0x18a   :  { %v315_v15 = vpop.permute.xlu1 %314 }
 0x18d   :  { %v159_v16 = vpop.permute.xlu0 %158 }
 0x18e   :  { %v471_v17 = vpop.permute.xlu1 %470  ;;  %1706 = vmatpush3.xpose.msk.msra.mxu1 %vm160_vm2, %v159_v16 }
 0x18f   :  { %1726 = vmatpush3.xpose.msk.msra.mxu0 %vm160_vm2, %v471_v17  ;;  %1710 = vmatprep.subr.mxu1 %v1964_v8 }
 0x190   :  { %1735 = vmatprep.subr.mxu0 %v1964_v8 }
 0x191   :  { %1708 = vmatmul.mubr.msk.f32.vlgmr.msra.gmra.mrb[0].mxu1 %vm160_vm2, %v2075_v13  ;;  %v393_v18 = vpop.permute.xlu0 %392 }
 0x192   :  { %v469_v19 = vpop.permute.xlu1 %468  ;;  %1711 = vmatpush3.xpose.msk.msra.mxu1 %vm160_vm2, %v237_v14  ;;  %1712 = vmatprep.mubr.msk.f32.mxu1 %vm1965_vm1, %v1964_v8 }
 0x193   :  { %1728 = vmatmul.mubr.msk.f32.vlgmr.msra.gmra.mrb[2].mxu0 %vm160_vm2, %v469_v19  ;;  %1715 = vmatprep.subr.mxu1 %v1964_v8 }
 0x194   :  { %1737 = vmatprep.mubr.msk.f32.mxu0 %vm1965_vm1, %v1964_v8 }
 0x195   :  { %1713 = vmatmul.mubr.msk.f32.vlgmr.msra.gmra.mrb[2].mxu1 %vm160_vm2, %v2073_v11  ;;  %v313_v20 = vpop.permute.xlu0 %312 }
 0x196   :  { %v627_v21 = vpop.permute.xlu1 %626  ;;  %1716 = vmatpush3.xpose.msk.msra.mxu1 %vm160_vm2, %v315_v15  ;;  %1717 = vmatprep.mubr.msk.f32.mxu1 %vm1965_vm1, %v1964_v8 }
 0x197   :  { %1736 = vmatpush3.xpose.msk.msra.mxu0 %vm160_vm2, %v627_v21  ;;  %1720 = vmatprep.subr.mxu1 %v1964_v8 }
 0x198   :  { %1745 = vmatprep.subr.mxu0 %v1964_v8 }
 0x199   :  { %1718 = vmatmul.mubr.msk.f32.vlgmr.msra.gmra.mrb[4].mxu1 %vm160_vm2, %v313_v20  ;;  %v391_v22 = vpop.permute.xlu0 %390 }
 0x19a   :  { %v625_v23 = vpop.permute.xlu1 %624  ;;  %1721 = vmatpush3.xpose.msk.msra.mxu1 %vm160_vm2, %v393_v18  ;;  %1722 = vmatprep.mubr.msk.f32.mxu1 %vm1965_vm1, %v1964_v8 }
 0x19b   :  { %1738 = vmatmul.mubr.msk.f32.vlgmr.msra.gmra.mrb[4].mxu0 %vm160_vm2, %v625_v23  ;;  %1730 = vmatprep.subr.mxu1 %v1964_v8 }
 0x19c   :  { %1747 = vmatprep.mubr.msk.f32.mxu0 %vm1965_vm1, %v1964_v8 }
 0x19d   :  { %1723 = vmatmul.mubr.msk.f32.vlgmr.msra.gmra.mrb[6].mxu1 %vm160_vm2, %v391_v22  ;;  %v549_v24 = vpop.permute.xlu0 %548 }
 0x19e   :  { %v547_v25 = vpop.permute.xlu1 %546  ;;  %1731 = vmatpush3.xpose.msk.msra.mxu1 %vm160_vm2, %v549_v24  ;;  %1732 = vmatprep.mubr.msk.f32.mxu1 %vm1965_vm1, %v1964_v8 }
 0x19f   :  { %1740 = vmatprep.subr.mxu1 %v1964_v8 }
 0x1a1   :  { %1733 = vmatmul.mubr.msk.f32.vlgmr.msra.gmra.mrb[8].mxu1 %vm160_vm2, %v547_v25  ;;  %v705_v26 = vpop.permute.xlu0 %704 }
 0x1a2   :  { %1741 = vmatpush3.xpose.msk.msra.mxu1 %vm160_vm2, %v705_v26  ;;  %1742 = vmatprep.mubr.msk.f32.mxu1 %vm1965_vm1, %v1964_v8  ;;  %v703_v27 = vpop.permute.xlu1 %702 }
 0x1a3   :  { %1750 = vmatprep.subr.mxu1 %v1964_v8 }
 0x1a5   :  { %1743 = vmatmul.mubr.msk.f32.vlgmr.msra.gmra.mrb[10].mxu1 %vm160_vm2, %v703_v27 }
 0x1a6   :  { %1752 = vmatprep.mubr.msk.f32.mxu1 %vm1965_vm1, %v1964_v8 }
 0x264   :  { %v231_v28 = vpop.f32.mrb[0].mxu1 }
 0x265   :  { %v1709_v29 = vpop.f32.mrb[1].mxu1  ;;  %v780_v30 = vsel %vm160_vm2, %v231_v28, -inf }
 0x266   :  { %v542_v31 = vpop.f32.mrb[2].mxu0  ;;  %781 = vmax.xlane.f32.xlu0 %v780_v30 }
 0x267   :  { %v1729_v32 = vpop.f32.mrb[3].mxu0  ;;  %v792_v35 = vsel %vm160_vm2, %v542_v31, -inf }
 0x268   :  { %v308_v33 = vpop.f32.mrb[2].mxu1 }
 0x269   :  { %v1714_v34 = vpop.f32.mrb[3].mxu1  ;;  %v783_v44 = vsel %vm160_vm2, %v308_v33, -inf }
 0x26a   :  { %793 = vmax.xlane.f32.xlu0 %v792_v35 }
 0x26c   :  { %v386_v36 = vpop.f32.mrb[4].mxu1 }
 0x26d   :  { %v1719_v37 = vpop.f32.mrb[5].mxu1  ;;  %v786_v38 = vsel %vm160_vm2, %v386_v36, -inf }
 0x26e   :  { %v698_v39 = vpop.f32.mrb[4].mxu0  ;;  %787 = vmax.xlane.f32.xlu1 %v786_v38 }
 0x26f   :  { %v1739_v40 = vpop.f32.mrb[5].mxu0  ;;  %v798_v41 = vsel %vm160_vm2, %v698_v39, -inf }
 0x270   :  { %799 = vmax.xlane.f32.xlu0 %v798_v41  ;;  %v464_v42 = vpop.f32.mrb[6].mxu1 }
 0x271   :  { %v1724_v43 = vpop.f32.mrb[7].mxu1  ;;  %v789_v45 = vsel %vm160_vm2, %v464_v42, -inf }
 0x272   :  { %784 = vmax.xlane.f32.xlu1 %v783_v44 }
 0x274   :  { %790 = vmax.xlane.f32.xlu0 %v789_v45  ;;  %v620_v46 = vpop.f32.mrb[8].mxu1 }
 0x275   :  { %v1734_v47 = vpop.f32.mrb[9].mxu1  ;;  %v795_v48 = vsel %vm160_vm2, %v620_v46, -inf }
 0x276   :  { %796 = vmax.xlane.f32.xlu1 %v795_v48 }
 0x278   :  { %v776_v49 = vpop.f32.mrb[10].mxu1 }
 0x279   :  { %v1744_v50 = vpop.f32.mrb[11].mxu1  ;;  %v801_v51 = vsel %vm160_vm2, %v776_v49, -inf }
 0x27a   :  { %802 = vmax.xlane.f32.xlu0 %v801_v51 }
 0x287   :  { %868 = vrot.lane.b32.xlu1 %v2075_v13, %s1973_s13 }
 0x28b   :  { %1020 = vrot.lane.b32.xlu1 %v2075_v13, %s1974_s14 }
 0x28f   :  { %1096 = vrot.lane.b32.xlu1 %v2075_v13, %s1975_s15 }
 0x290   :  { %944 = vrot.lane.b32.xlu0 %v2075_v13, %s1976_s16 }
 0x293   :  { %1265 = vrot.lane.b32.xlu1 %v2073_v11, %s1976_s16 }
 0x294   :  { %1189 = vrot.lane.b32.xlu0 %v2073_v11, %s1973_s13 }
 0x2f3   :  { %v782_v52 = vpop.xlane.xlu0 %781 }
 0x2f4   :  { %v804_v53 = vsub.f32 %v231_v28, %v782_v52 }
 0x2f6   :  { %v812_v54 = vmul.f32 1.442695, %v804_v53 }
 0x2f7   :  { %v794_v55 = vpop.xlane.xlu0 %793 }
 0x2f8   :  { %1833 = vpow2.f32 %v812_v54  ;;  %v808_v56 = vsub.f32 %v542_v31, %v794_v55 }
 0x2fa   :  { %v820_v57 = vmul.f32 1.442695, %v808_v56 }
 0x2fb   :  { %v788_v58 = vpop.xlane.xlu1 %787 }
 0x2fc   :  { %1835 = vpow2.f32 %v820_v57  ;;  %v806_v59 = vsub.f32 %v386_v36, %v788_v58 }
 0x2fd   :  { %v800_v60 = vpop.xlane.xlu0 %799 }
 0x2fe   :  { %v810_v61 = vsub.f32 %v698_v39, %v800_v60  ;;  %v816_v62 = vmul.f32 1.442695, %v806_v59 }
 0x2ff   :  { %v785_v63 = vpop.xlane.xlu1 %784 }
 0x300   :  { %v824_v0 = vmul.f32 1.442695, %v810_v61  ;;  %v805_v1 = vsub.f32 %v308_v33, %v785_v63 }
 0x301   :  { %v791_v2 = vpop.xlane.xlu0 %790 }
 0x302   :  { %v1834_v3 = vpop.eup %1833  ;;  %1837 = vpow2.f32 %v824_v0  ;;  %v814_v4 = vmul.f32 1.442695, %v805_v1  ;;  %v807_v5 = vsub.f32 %v464_v42, %v791_v2  ;;  %v1508_v1 = vld [vmem:[#allocation7] sm:$0xff]  ;;  %v1509_v2 = vld [vmem:[#allocation7 + $0x8] sm:$0xff] }
 0x303   :  { %1839 = vpow2.f32 %v816_v62  ;;  %v797_v6 = vpop.xlane.xlu1 %796  ;;  %v828_v7 = vsel %vm160_vm2, %v1834_v3, 0.0 }
 0x304   :  { %1841 = vpow2.f32 %v814_v4  ;;  %v818_v9 = vmul.f32 1.442695, %v807_v5  ;;  %v809_v10 = vsub.f32 %v620_v46, %v797_v6  ;;  %829 = vadd.xlane.f32.xlu1 %v828_v7  ;;  %v1510_v4 = vld [vmem:[#allocation7 + $0x10] sm:$0xff]  ;;  %v1511_v5 = vld [vmem:[#allocation7 + $0x18] sm:$0xff] }
 0x305   :  { %v1808_v6 = vpack.c.bf16 %v1511_v5, %v1510_v4 }
 0x306   :  { %v1836_v12 = vpop.eup %1835  ;;  %v822_v13 = vmul.f32 1.442695, %v809_v10  ;;  %1843 = vpow2.f32 %v818_v9 }
 0x307   :  { %v869_v14 = vpop.permute.xlu1 %868  ;;  %v803_v15 = vpop.xlane.xlu0 %802  ;;  %v840_v16 = vsel %vm160_vm2, %v1836_v12, 0.0 }
 0x308   :  { %1845 = vpow2.f32 %v822_v13  ;;  %v811_v17 = vsub.f32 %v776_v49, %v803_v15  ;;  %1746 = vmatpush3.msra.mxu0 %v869_v14  ;;  %841 = vadd.xlane.f32.xlu1 %v840_v16 }
 0x309   :  { %1755 = vmatprep.subr.mxu0 %v1964_v8 }
 0x30a   :  { %v826_v18 = vmul.f32 1.442695, %v811_v17 }
 0x30b   :  { %v945_v19 = vpop.permute.xlu0 %944  ;;  %v1021_v32 = vpop.permute.xlu1 %1020 }
 0x30c   :  { %v2152_v20 = vpop.eup %1837  ;;  %1847 = vpow2.f32 %v826_v18  ;;  %1751 = vmatpush3.msra.mxu1 %v945_v19 }
 0x30d   :  { %v1840_v21 = vpop.eup %1839  ;;  %v846_v22 = vsel %vm160_vm2, %v2152_v20, 0.0  ;;  %1760 = vmatprep.subr.mxu1 %v1964_v8 }
 0x30e   :  { %v1842_v23 = vpop.eup %1841  ;;  %847 = vadd.xlane.f32.xlu0 %v846_v22  ;;  %v834_v26 = vsel %vm160_vm2, %v1840_v21, 0.0 }
 0x30f   :  { %v831_v24 = vsel %vm160_vm2, %v1842_v23, 0.0  ;;  %v1097_v33 = vpop.permute.xlu1 %1096  ;;  %v1190_v37 = vpop.permute.xlu0 %1189 }
 0x310   :  { %832 = vadd.xlane.f32.xlu1 %v831_v24  ;;  %v2158_v25 = vpop.eup %1843 }
 0x311   :  { %v837_v29 = vsel %vm160_vm2, %v2158_v25, 0.0 }
 0x312   :  { %v1846_v27 = vpop.eup %1845  ;;  %835 = vadd.xlane.f32.xlu0 %v834_v26 }
 0x313   :  { %v843_v28 = vsel %vm160_vm2, %v1846_v27, 0.0  ;;  %v1266_v34 = vpop.permute.xlu1 %1265 }
 0x314   :  { %844 = vadd.xlane.f32.xlu1 %v843_v28 }
 0x316   :  { %v2164_v30 = vpop.eup %1847  ;;  %838 = vadd.xlane.f32.xlu0 %v837_v29 }
 0x317   :  { %v849_v31 = vsel %vm160_vm2, %v2164_v30, 0.0 }
 0x31a   :  { %850 = vadd.xlane.f32.xlu0 %v849_v31 }
 0x325   :  { %1417 = vrot.lane.b32.xlu1 %v2073_v11, %s1975_s15 }
 0x330   :  { %1341 = vrot.lane.b32.xlu0 %v2073_v11, %s1974_s14 }
 0x391   :  { %v830_v35 = vpop.xlane.xlu1 %829 }
 0x392   :  { %1849 = vrcp.f32 %v830_v35 }
 0x395   :  { %v842_v36 = vpop.xlane.xlu1 %841 }
 0x396   :  { %1851 = vrcp.f32 %v842_v36 }
 0x39b   :  { %v848_v38 = vpop.xlane.xlu0 %847 }
 0x39c   :  { %v1850_v39 = vpop.eup %1849 }
 0x39d   :  { %v860_v40 = vmul.f32 %v1850_v39, %v1834_v3  ;;  %v833_v41 = vpop.xlane.xlu1 %832  ;;  %v1804_v3 = vpack.c.bf16 %v1509_v2, %v1508_v1 }
 0x39e   :  { %1853 = vrcp.f32 %v833_v41 }
 0x39f   :  { %1748 = vmatmul.mubr.msk.f32.vlgmr.msra.gmra.mrb[6].mxu0 %vm160_vm2, %v860_v40  ;;  %v836_v42 = vpop.xlane.xlu0 %835 }
 0x3a0   :  { %v1852_v43 = vpop.eup %1851  ;;  %1756 = vmatpush3.msra.mxu0 %v1021_v32  ;;  %1855 = vrcp.f32 %v836_v42  ;;  %1757 = vmatprep.mubr.msk.f32.mxu0 %vm1965_vm1, %v1964_v8  ;;  %v1647_v32 = vld [vmem:[%s2229_s4] ss:$0 sm:$0xff] }
 0x3a1   :  { %v864_v11 = vmul.f32 %v1852_v43, %v1836_v12  ;;  %1857 = vrcp.f32 %v848_v38  ;;  %v845_v44 = vpop.xlane.xlu1 %844  ;;  %1765 = vmatprep.subr.mxu0 %v1964_v8 }
 0x3a2   :  { %1859 = vrcp.f32 %v845_v44 }
 0x3a3   :  { %1758 = vmatmul.mubr.msk.f32.vlgmr.msra.gmra.mrb[8].mxu0 %vm160_vm2, %v864_v11  ;;  %v839_v45 = vpop.xlane.xlu0 %838 }
 0x3a4   :  { %1766 = vmatpush3.msra.mxu0 %v1190_v37  ;;  %1767 = vmatprep.mubr.msk.f32.mxu0 %vm1965_vm1, %v1964_v8  ;;  %1861 = vrcp.f32 %v839_v45 }
 0x3a5   :  { %1775 = vmatprep.subr.mxu0 %v1964_v8  ;;  %v1418_v59 = vpop.permute.xlu1 %1417 }
 0x3a7   :  { %v851_v46 = vpop.xlane.xlu0 %850 }
 0x3a8   :  { %v1854_v47 = vpop.eup %1853  ;;  %1863 = vrcp.f32 %v851_v46 }
 0x3a9   :  { %v861_v48 = vmul.f32 %v1854_v47, %v1842_v23 }
 0x3aa   :  { %v1856_v49 = vpop.eup %1855 }
 0x3ab   :  { %v1858_v50 = vpop.eup %1857  ;;  %v862_v51 = vmul.f32 %v1856_v49, %v1840_v21  ;;  %1768 = vmatmul.mubr.msk.f32.vlgmr.msra.gmra.mrb[10].mxu0 %vm160_vm2, %v861_v48  ;;  %v1342_v52 = vpop.permute.xlu0 %1341 }
 0x3ac   :  { %v1860_v53 = vpop.eup %1859  ;;  %1776 = vmatpush3.msra.mxu0 %v1342_v52  ;;  %1777 = vmatprep.mubr.msk.f32.mxu0 %vm1965_vm1, %v1964_v8  ;;  %v866_v55 = vmul.f32 %v1858_v50, %v2152_v20 }
 0x3ad   :  { %v865_v54 = vmul.f32 %v1860_v53, %v1846_v27  ;;  %1753 = vmatmul.mubr.msk.f32.vlgmr.msra.gmra.mrb[12].mxu1 %vm160_vm2, %v862_v51  ;;  %1805 = vmatprep.subr.bf16.mxu0 %v1804_v3 }
 0x3ae   :  { %1761 = vmatpush3.msra.mxu1 %v1097_v33  ;;  %1762 = vmatprep.mubr.msk.f32.mxu1 %vm1965_vm1, %v1964_v8  ;;  %v1862_v56 = vpop.eup %1861 }
 0x3af   :  { %1778 = vmatmul.mubr.msk.f32.vlgmr.msra.gmra.mrb[12].mxu0 %vm160_vm2, %v865_v54  ;;  %1770 = vmatprep.subr.mxu1 %v1964_v8  ;;  %v863_v57 = vmul.f32 %v1862_v56, %v2158_v25 }
 0x3b0   :  { %1807 = vmatpush3.bf16.msra.mxu0 %v1804_v3 }
 0x3b1   :  { %1763 = vmatmul.mubr.msk.f32.vlgmr.msra.gmra.mrb[14].mxu1 %vm160_vm2, %v866_v55  ;;  %1809 = vmatprep.subr.bf16.mxu0 %v1808_v6 }
 0x3b2   :  { %1771 = vmatpush3.msra.mxu1 %v1266_v34  ;;  %1772 = vmatprep.mubr.msk.f32.mxu1 %vm1965_vm1, %v1964_v8  ;;  %v1864_v58 = vpop.eup %1863 }
 0x3b3   :  { %1780 = vmatprep.subr.mxu1 %v1964_v8  ;;  %v867_v60 = vmul.f32 %v1864_v58, %v2164_v30 }
 0x3b4   :  { %1811 = vmatpush3.bf16.msra.mxu0 %v1808_v6 }
 0x3b5   :  { %1773 = vmatmul.mubr.msk.f32.vlgmr.msra.gmra.mrb[16].mxu1 %vm160_vm2, %v863_v57 }
 0x3b6   :  { %1781 = vmatpush3.msra.mxu1 %v1418_v59  ;;  %1782 = vmatprep.mubr.msk.f32.mxu1 %vm1965_vm1, %v1964_v8 }
 0x3b9   :  { %1783 = vmatmul.mubr.msk.f32.vlgmr.msra.gmra.mrb[18].mxu1 %vm160_vm2, %v867_v60 }
 0x472   :  { %v940_v61 = vpop.f32.mrb[6].mxu0 }
 0x473   :  { %v1749_v62 = vpop.f32.mrb[7].mxu0 }
 0x476   :  { %v1092_v63 = vpop.f32.mrb[8].mxu0 }
 0x477   :  { %1177 = vrot.lane.b32.xlu1 %v1092_v63, %s1977_s1  ;;  %v1759_v0 = vpop.f32.mrb[9].mxu0 }
 0x47e   :  { %v1261_v7 = vpop.f32.mrb[10].mxu0 }
 0x47f   :  { %v1769_v8 = vpop.f32.mrb[11].mxu0 }
 0x480   :  { %v1016_v9 = vpop.f32.mrb[12].mxu1 }
 0x481   :  { %1173 = vrot.lane.b32.xlu0 %v1016_v9, %s1962_s6  ;;  %v1754_v10 = vpop.f32.mrb[13].mxu1 }
 0x482   :  { %v1413_v12 = vpop.f32.mrb[12].mxu0 }
 0x483   :  { %v1779_v13 = vpop.f32.mrb[13].mxu0 }
 0x484   :  { %v1168_v14 = vpop.f32.mrb[14].mxu1 }
 0x485   :  { %1181 = vrot.lane.b32.xlu1 %v1168_v14, %s1978_s17  ;;  %v1764_v15 = vpop.f32.mrb[15].mxu1 }
 0x488   :  { %v1337_v16 = vpop.f32.mrb[16].mxu1 }
 0x489   :  { %1494 = vrot.lane.b32.xlu0 %v1337_v16, %s1962_s6  ;;  %v1774_v17 = vpop.f32.mrb[17].mxu1 }
 0x48c   :  { %v1489_v18 = vpop.f32.mrb[18].mxu1 }
 0x48d   :  { %1502 = vrot.lane.b32.xlu1 %v1489_v18, %s1978_s17  ;;  %v1784_v19 = vpop.f32.mrb[19].mxu1  ;;  %1498 = vrot.lane.b32.xlu0 %v1413_v12, %s1977_s1 }
 0x4e9   :  { %v1178_v20 = vpop.permute.xlu1 %1177 }
 0x4f3   :  { %v1174_v21 = vpop.permute.xlu0 %1173 }
 0x4f4   :  { %v1184_v22 = vsel %vm160_vm2, %v940_v61, %v1174_v21 }
 0x4f5   :  { %v1186_v24 = vsel %vm1185_vm3, %v1184_v22, %v1178_v20 }
 0x4f7   :  { %v1182_v23 = vpop.permute.xlu1 %1181 }
 0x4f8   :  { %v1188_v25 = vsel %vm1187_vm4, %v1186_v24, %v1182_v23 }
 0x4f9   :  { %1793 = vmatprep.mubr.msk.f32.mxu0 %vm75_vm0, %v1188_v25 }
 0x4fb   :  { %v1495_v26 = vpop.permute.xlu0 %1494 }
 0x4fc   :  { %v1505_v27 = vsel %vm160_vm2, %v1261_v7, %v1495_v26 }
 0x4ff   :  { %v1503_v28 = vpop.permute.xlu1 %1502  ;;  %v1499_v29 = vpop.permute.xlu0 %1498 }
 0x500   :  { %v1506_v30 = vsel %vm1185_vm3, %v1505_v27, %v1499_v29 }
 0x501   :  { %v1507_v31 = vsel %vm1187_vm4, %v1506_v30, %v1503_v28 }
 0x502   :  { %1794 = vmatmul.mubr.msk.f32.vlgmr.msra.gmra.mrb[14].mxu0 %vm75_vm0, %v1507_v31 }
 0x5d5   :  { %v1795_v33 = vpop.f32.mrb[14].mxu0 }
 0x5d6   :  { %v1597_v34 = vadd.f32 %v1795_v33, %v1647_v32  ;;  %v1591_v35 = vpop.f32.mrb[15].mxu0 }
 0x5d7   :  { %v1592_v36 = vadd.f32 %v1647_v32, %v1591_v35 }
 0x5d8   :  { %1601 = vst.msk [vmem:[#allocation8 + $0x8] sm:$0xff] %vm75_vm0, %v1597_v34 }
 0x5d9   :  { %1600 = vst.msk [vmem:[#allocation8] sm:$0xff] %vm75_vm0, %v1592_v36 }
 0x5da   :  { %1942 = shalt.err (!%p1939_p0)
}
 0x5db   :  { %s1943_s25 = scalar_lea.hbm %s2230_s5, 256 }
 0x5dc   :  { %p1944_p1 = scmp.ne.s32.totalorder %s2230_s5, %s1943_s25  ;;  %p1947_p2 = scmp.lt.u32.totalorder %s1943_s25, %s2230_s5 }
 0x5de   :  { %p1949_p3 = pnand %p1947_p2, %p1944_p1 }
 0x5e0   :  { %1952 = shalt.err (!%p1949_p3)
}
 0x5e1   :  { %1613 = dma.vmem_to_hbm [thread:$0]  %s1608_s22, 256, %s2230_s5, [#allocation4], %s1961_s30, %s1961_s30, %s1962_s6  }
 0x5e2   :  { %1957 = dma.done.wait [#allocation4], 256  }
 0x5e3   :  { %1958 = vsyncadd [#allocation4], 4294967040 }
 0x5e4   :  { %1617 = vsyncpa [#allocation3], 1 }
 0x5e5   :  { %1618 = vsyncpa [#allocation6], 1 }
 0x5e6   :  { %1619 = vsyncpa [#allocation4], 1 }

</bundles_post_ra>
